<compile_context>
chip_gen: v6e
topology: v6e:2x2x1
jax: 0.10.0
libtpu: 0.0.40
codegen_flags: <defaults>
</compile_context>

<pallas_src>
import functools

import jax
import jax.numpy as jnp
from jax.experimental import pallas as pl
from jax.experimental.pallas import tpu as pltpu

IN_DIM = 48
LATENT_DIM = 3
HIDDEN_LAYER_DIM = [64, 32]       # hidden_layer_dim from the module ctor

_MAX_BLOCK_ROWS = 4096            # 4096 * 48 * 4 B = 768 KiB per f32 x tile (x2 buffers)


def _encoder_kernel(n_layers, latent_dim, x_ref, eps_ref, w_ref, b_ref,
                    enc_ref, kl_ref):
    """One batch tile of the VariationalEncoder forward pass.

    x_ref   : (TB, IN)             raw input tile (no host-side padding)
    eps_ref : (TB, LATENT)         pre-sampled N(0,1) noise
    w_ref   : (n_layers, PAD, PAD) packed bf16 weights; layer i lives in [:in_i, :out_i]
    b_ref   : (n_layers, 1, PAD)   packed f32 biases (zero beyond out_i)
    enc_ref : (TB, LATENT)         encoded output
    kl_ref  : (TB, 1)              per-row KL contribution (summed outside the kernel)
    """
    cdt = w_ref.dtype              # bf16 matmul inputs, f32 accumulation (MXU native)

    # Fused Linear(48,64) @ Linear(64,32), followed by the ReLU from the fc stack.
    # Slicing the slab to the true input width (48 rows, sublane-aligned) is free
    # and lets x come in un-padded.
    x = x_ref[...].astype(cdt)
    w0 = w_ref[0, :x.shape[1], :]
    h = jnp.dot(x, w0, preferred_element_type=jnp.float32) + b_ref[0]
    h = jnp.maximum(h, 0.0).astype(cdt)

    # Any further hidden Linear layers (each followed by ReLU in the module).
    for i in range(1, n_layers - 1):
        h = jnp.dot(h, w_ref[i], preferred_element_type=jnp.float32) + b_ref[i]
        h = jnp.maximum(h, 0.0).astype(cdt)

    # Fused head: columns [0:L) = mu (self.mean), [L:2L) = log_var (self.var).
    head = (jnp.dot(h, w_ref[n_layers - 1], preferred_element_type=jnp.float32)
            + b_ref[n_layers - 1])
    mu = head[:, :latent_dim]
    log_var = head[:, latent_dim:2 * latent_dim]

    sigma = jnp.exp(0.5 * log_var)          # one EUP exp; sigma*sigma == exp(log_var)
    enc_ref[...] = (mu + sigma * eps_ref[...]).astype(enc_ref.dtype)
    # Mirrors torch.sum(-1/2 - log_var + mu**2 + log_var.exp()), per row.
    # Rows of a ragged last tile are discarded by Pallas' OOB-write masking, so the
    # outside jnp.sum over (B, 1) is exact with no explicit in-kernel mask.
    kl_ref[...] = jnp.sum(-0.5 - log_var + mu * mu + sigma * sigma,
                          axis=-1, keepdims=True)


def pack_params(fc_params, var_params, mean_params, compute_dtype=jnp.bfloat16):
    """Pack every Linear layer into two zero-padded slabs.

    * Linear(48,h0) and Linear(h0,h1) (no activation in between in the module) are
      fused into a single (48,h1) layer.
    * The last layer is the fused [mu | log_var] head (mu first: lane-aligned with
      eps / encoded in the kernel).
    Layer i weight (in_i, out_i) lives at w_slab[i, :in_i, :out_i]; its bias at
    b_slab[i, 0, :out_i].  Weights are returned in bf16 (MXU inputs), biases in f32.
    """
    hi = jax.lax.Precision.HIGHEST
    (w0, b0), (w1, b1) = fc_params[0], fc_params[1]
    w01 = jnp.dot(w0, w1, precision=hi)
    b01 = jnp.dot(jnp.ravel(b0), w1, precision=hi) + jnp.ravel(b1)
    fused = [(w01, b01)] + [(w, jnp.ravel(b)) for (w, b) in fc_params[2:]]

    w_head = jnp.concatenate([mean_params[0], var_params[0]], axis=1)   # [mu | log_var]
    b_head = jnp.concatenate([jnp.ravel(mean_params[1]), jnp.ravel(var_params[1])])
    layers = fused + [(w_head, b_head)]

    pad = 0
    for w, _ in layers:
        pad = max(pad, w.shape[0], w.shape[1])
    pad = ((pad + 7) // 8) * 8                     # sublane-align

    n = len(layers)
    w_slab = jnp.zeros((n, pad, pad), jnp.float32)
    b_slab = jnp.zeros((n, 1, pad), jnp.float32)
    for i, (w, b) in enumerate(layers):
        w_slab = w_slab.at[i, :w.shape[0], :w.shape[1]].set(w.astype(jnp.float32))
        b_slab = b_slab.at[i, 0, :b.shape[0]].set(b.astype(jnp.float32))
    return w_slab.astype(compute_dtype), b_slab


def _pick_block_rows(batch):
    """Large, generation-agnostic batch tiles.

    Per-grid-step overhead (~0.35 us) dominates for small tiles, so tiles are as
    large as reasonable; but when the batch allows we keep >= 2 grid steps so the
    "parallel" batch axis can be split across v7x's two TensorCores.  Ragged last
    tiles are handled by Pallas' OOB masking, so no divisibility is required.
    """
    if batch <= 16:
        return batch
    tb = min(_MAX_BLOCK_ROWS, pl.cdiv(batch, 2))
    tb = ((tb + 7) // 8) * 8                       # sublane-align the block
    return min(tb, batch)


def variational_encoder_forward(x, w_slab, b_slab, eps, *, block_rows=None):
    """x: (B, 48). Returns (encoded (B, LATENT_DIM) f32, kl scalar f32)."""
    B, in_dim = x.shape
    n_layers, pad, _ = w_slab.shape
    latent = eps.shape[1]
    assert in_dim <= pad, (in_dim, pad)
    assert eps.shape[0] == B

    tb = block_rows if block_rows is not None else _pick_block_rows(B)
    grid = (pl.cdiv(B, tb),)

    kernel = functools.partial(_encoder_kernel, n_layers, latent)

    encoded, kl_rows = pl.pallas_call(
        kernel,
        grid=grid,
        in_specs=[
            pl.BlockSpec((tb, in_dim), lambda i: (i, 0)),                # x tile (no pad)
            pl.BlockSpec((tb, latent), lambda i: (i, 0)),                # eps tile
            pl.BlockSpec((n_layers, pad, pad), lambda i: (0, 0, 0)),     # weights (resident)
            pl.BlockSpec((n_layers, 1, pad), lambda i: (0, 0, 0)),       # biases  (resident)
        ],
        out_specs=(
            pl.BlockSpec((tb, latent), lambda i: (i, 0)),                # encoded tile
            pl.BlockSpec((tb, 1), lambda i: (i, 0)),                     # per-row KL
        ),
        out_shape=(
            jax.ShapeDtypeStruct((B, latent), jnp.float32),
            jax.ShapeDtypeStruct((B, 1), jnp.float32),
        ),
        compiler_params=pltpu.CompilerParams(dimension_semantics=("parallel",)),
    )(x, eps, w_slab, b_slab)

    kl = jnp.sum(kl_rows)          # tiny cross-row reduction outside the kernel
    return encoded, kl


def init_params(key, in_dim, hidden_dims, latent_dim):
    """Deterministic init matching the PyTorch module's shapes.

    fc weights: kaiming_normal_ (std = sqrt(2 / fan_in)); biases and var/mean
    layers: PyTorch-default-style uniform bounds. Weights stored as (in, out).
    """
    params_fc = []
    dims = [in_dim] + list(hidden_dims)
    keys = jax.random.split(key, 2 * len(hidden_dims) + 4)
    k = 0
    for i in range(len(hidden_dims)):
        fan_in, fan_out = dims[i], dims[i + 1]
        w = jax.random.normal(keys[k], (fan_in, fan_out), jnp.float32) * jnp.sqrt(2.0 / fan_in)
        k += 1
        bound = 1.0 / jnp.sqrt(fan_in)
        b = jax.random.uniform(keys[k], (fan_out,), jnp.float32, -bound, bound)
        k += 1
        params_fc.append((w, b))

    def head(kw, kb, fan_in, fan_out):
        bound = 1.0 / jnp.sqrt(fan_in)
        w = jax.random.uniform(kw, (fan_in, fan_out), jnp.float32, -bound, bound)
        b = jax.random.uniform(kb, (fan_out,), jnp.float32, -bound, bound)
        return (w, b)

    var_p = head(keys[k], keys[k + 1], hidden_dims[-1], latent_dim)
    mean_p = head(keys[k + 2], keys[k + 3], hidden_dims[-1], latent_dim)
    return params_fc, var_p, mean_p


def _reference_forward(x, fc_params, var_params, mean_params, eps):
    """Pure-jnp f32 reference mirroring the PyTorch forward."""
    hi = jax.lax.Precision.HIGHEST
    h = x
    for i, (w, b) in enumerate(fc_params):
        h = jnp.dot(h, w, precision=hi) + b
        if i >= 1:
            h = jnp.maximum(h, 0.0)
    log_var = jnp.dot(h, var_params[0], precision=hi) + var_params[1]
    mu = jnp.dot(h, mean_params[0], precision=hi) + mean_params[1]
    encoded = mu + jnp.exp(log_var / 2.0) * eps
    kl = jnp.sum(-0.5 - log_var + mu ** 2 + jnp.exp(log_var))
    return encoded, kl


if __name__ == "__main__":
    key = jax.random.PRNGKey(0)
    k_x, k_eps, k_params, k_x2, k_eps2 = jax.random.split(key, 5)

    fc_params, var_params, mean_params = init_params(
        k_params, IN_DIM, HIDDEN_LAYER_DIM, LATENT_DIM)
    w_slab, b_slab = pack_params(fc_params, var_params, mean_params)

    fwd = jax.jit(variational_encoder_forward, static_argnames=("block_rows",))

    # Kernel uses bf16 MXU inputs with f32 accumulation (per perf review); the
    # reference is f32/HIGHEST, so tolerances are widened from 2e-2 to 5e-2.
    RTOL = ATOL = 5e-2

    # Case 1: small batch, single tile (whole batch resident).
    B = 8
    x = jax.random.normal(k_x, (B, IN_DIM), jnp.float32)
    eps = jax.random.normal(k_eps, (B, LATENT_DIM), jnp.float32)   # pre-sampled N(0,1)
    encoded, kl = fwd(x, w_slab, b_slab, eps)
    jax.block_until_ready((encoded, kl))
    assert encoded.shape == (B, LATENT_DIM)
    assert kl.shape == ()
    enc_want, kl_want = _reference_forward(x, fc_params, var_params, mean_params, eps)
    assert jnp.allclose(encoded, enc_want, rtol=RTOL, atol=ATOL), (
        "encoded mismatch, max abs err = %e" % float(jnp.max(jnp.abs(encoded - enc_want))))
    assert jnp.allclose(kl, kl_want, rtol=RTOL, atol=ATOL), (float(kl), float(kl_want))

    # Case 2: ragged, 2-step parallel grid (block_rows=8 over B=10) — exercises the
    # multi-tile path and the OOB-masked last tile.
    B2 = 10
    x2 = jax.random.normal(k_x2, (B2, IN_DIM), jnp.float32)
    eps2 = jax.random.normal(k_eps2, (B2, LATENT_DIM), jnp.float32)
    encoded2, kl2 = fwd(x2, w_slab, b_slab, eps2, block_rows=8)
    jax.block_until_ready((encoded2, kl2))
    enc_want2, kl_want2 = _reference_forward(x2, fc_params, var_params, mean_params, eps2)
    assert jnp.allclose(encoded2, enc_want2, rtol=RTOL, atol=ATOL), (
        "ragged encoded mismatch, max abs err = %e"
        % float(jnp.max(jnp.abs(encoded2 - enc_want2))))
    assert jnp.allclose(kl2, kl_want2, rtol=RTOL, atol=ATOL), (float(kl2), float(kl_want2))

    print("KERNEL_OK")
</pallas_src>

<mosaic_0001>
module attributes {stable_mosaic.version = 11 : i64} {
  func.func @_encoder_kernel(%arg0: i32, %arg1: memref<8x48xf32, #tpu.memory_space<vmem>>, %arg2: memref<8x3xf32, #tpu.memory_space<vmem>>, %arg3: memref<2x48x48xbf16, #tpu.memory_space<vmem>>, %arg4: memref<2x1x48xf32, #tpu.memory_space<vmem>>, %arg5: memref<8x3xf32, #tpu.memory_space<vmem>>, %arg6: memref<8x1xf32, #tpu.memory_space<vmem>>) attributes {dimension_semantics = [#tpu.dimension_semantics<parallel>], iteration_bounds = array<i64: 1>, scalar_prefetch = 0 : i64, scratch_operands = 0 : i64, tpu.core_type = #tpu.core_type<tc>, window_params = [{transform_indices = @transform_0, window_bounds = array<i64: 8, 48>}, {transform_indices = @transform_1, window_bounds = array<i64: 8, 3>}, {pipeline_mode = #tpu.pipeline_mode<synchronous>, transform_indices = @transform_2, window_bounds = array<i64: 2, 48, 48>}, {pipeline_mode = #tpu.pipeline_mode<synchronous>, transform_indices = @transform_3, window_bounds = array<i64: 2, 1, 48>}, {transform_indices = @transform_4, window_bounds = array<i64: 8, 3>}, {transform_indices = @transform_5, window_bounds = array<i64: 8, 1>}]} {
    %c0 = arith.constant 0 : index
    %c0_0 = arith.constant 0 : index
    %0 = vector.load %arg1[%c0, %c0_0] : memref<8x48xf32, #tpu.memory_space<vmem>>, vector<8x48xf32>
    %1 = arith.truncf %0 : vector<8x48xf32> to vector<8x48xbf16>
    %c0_1 = arith.constant 0 : index
    %c0_2 = arith.constant 0 : index
    %c0_3 = arith.constant 0 : index
    %2 = vector.load %arg3[%c0_1, %c0_2, %c0_3] : memref<2x48x48xbf16, #tpu.memory_space<vmem>>, vector<1x48x48xbf16>
    %3 = vector.shape_cast %2 : vector<1x48x48xbf16> to vector<48x48xbf16>
    %cst = arith.constant dense<0.000000e+00> : vector<8x48xf32>
    %4 = tpu.matmul %1, %3, %cst {dimension_numbers = #tpu.dot_dimension_numbers<[1], [0], [0], [1], [0, 0, 1, 1], [], []>} : vector<8x48xbf16>, vector<48x48xbf16>, vector<8x48xf32> -> vector<8x48xf32>
    %c0_4 = arith.constant 0 : index
    %c0_5 = arith.constant 0 : index
    %c0_6 = arith.constant 0 : index
    %5 = vector.load %arg4[%c0_4, %c0_5, %c0_6] : memref<2x1x48xf32, #tpu.memory_space<vmem>>, vector<1x1x48xf32>
    %6 = vector.shape_cast %5 : vector<1x1x48xf32> to vector<1x48xf32>
    %7 = vector.broadcast %6 : vector<1x48xf32> to vector<8x48xf32>
    %8 = arith.addf %4, %7 : vector<8x48xf32>
    %cst_7 = arith.constant 0.000000e+00 : f32
    %9 = vector.broadcast %cst_7 : f32 to vector<8x48xf32>
    %10 = arith.maximumf %8, %9 : vector<8x48xf32>
    %11 = arith.truncf %10 : vector<8x48xf32> to vector<8x48xbf16>
    %c1 = arith.constant 1 : index
    %c0_8 = arith.constant 0 : index
    %c0_9 = arith.constant 0 : index
    %12 = vector.load %arg3[%c1, %c0_8, %c0_9] : memref<2x48x48xbf16, #tpu.memory_space<vmem>>, vector<1x48x48xbf16>
    %13 = vector.shape_cast %12 : vector<1x48x48xbf16> to vector<48x48xbf16>
    %cst_10 = arith.constant dense<0.000000e+00> : vector<8x48xf32>
    %14 = tpu.matmul %11, %13, %cst_10 {dimension_numbers = #tpu.dot_dimension_numbers<[1], [0], [0], [1], [0, 0, 1, 1], [], []>} : vector<8x48xbf16>, vector<48x48xbf16>, vector<8x48xf32> -> vector<8x48xf32>
    %c1_11 = arith.constant 1 : index
    %c0_12 = arith.constant 0 : index
    %c0_13 = arith.constant 0 : index
    %15 = vector.load %arg4[%c1_11, %c0_12, %c0_13] : memref<2x1x48xf32, #tpu.memory_space<vmem>>, vector<1x1x48xf32>
    %16 = vector.shape_cast %15 : vector<1x1x48xf32> to vector<1x48xf32>
    %17 = vector.broadcast %16 : vector<1x48xf32> to vector<8x48xf32>
    %18 = arith.addf %14, %17 : vector<8x48xf32>
    %19 = vector.extract_strided_slice %18 {offsets = [0, 0], sizes = [8, 3], strides = [1, 1]} : vector<8x48xf32> to vector<8x3xf32>
    %20 = vector.extract_strided_slice %18 {offsets = [0, 3], sizes = [8, 3], strides = [1, 1]} : vector<8x48xf32> to vector<8x3xf32>
    %cst_14 = arith.constant 5.000000e-01 : f32
    %21 = vector.broadcast %cst_14 : f32 to vector<8x3xf32>
    %22 = arith.mulf %21, %20 : vector<8x3xf32>
    %23 = math.exp %22 : vector<8x3xf32>
    %c0_15 = arith.constant 0 : index
    %c0_16 = arith.constant 0 : index
    %24 = vector.load %arg2[%c0_15, %c0_16] : memref<8x3xf32, #tpu.memory_space<vmem>>, vector<8x3xf32>
    %25 = arith.mulf %23, %24 : vector<8x3xf32>
    %26 = arith.addf %19, %25 : vector<8x3xf32>
    %c0_17 = arith.constant 0 : index
    %c0_18 = arith.constant 0 : index
    %27 = vector.load %arg5[%c0_17, %c0_18] : memref<8x3xf32, #tpu.memory_space<vmem>>, vector<8x3xf32>
    tpu.vector_store %arg5[%c0_17, %c0_18], %26 {strides = array<i32>} : memref<8x3xf32, #tpu.memory_space<vmem>>, vector<8x3xf32>,
    %cst_19 = arith.constant -5.000000e-01 : f32
    %28 = vector.broadcast %cst_19 : f32 to vector<8x3xf32>
    %29 = arith.subf %28, %20 : vector<8x3xf32>
    %30 = arith.mulf %19, %19 : vector<8x3xf32>
    %31 = arith.addf %29, %30 : vector<8x3xf32>
    %32 = arith.mulf %23, %23 : vector<8x3xf32>
    %33 = arith.addf %31, %32 : vector<8x3xf32>
    %cst_20 = arith.constant dense<0.000000e+00> : vector<8xf32>
    %34 = vector.multi_reduction <add>, %33, %cst_20 [1] : vector<8x3xf32> to vector<8xf32>
    %35 = vector.shape_cast %34 : vector<8xf32> to vector<8x1xf32>
    %c0_21 = arith.constant 0 : index
    %c0_22 = arith.constant 0 : index
    %36 = vector.load %arg6[%c0_21, %c0_22] : memref<8x1xf32, #tpu.memory_space<vmem>>, vector<8x1xf32>
    tpu.vector_store %arg6[%c0_21, %c0_22], %35 {strides = array<i32>} : memref<8x1xf32, #tpu.memory_space<vmem>>, vector<8x1xf32>,
    return
  }
  func.func @transform_0(%arg0: i32) -> (i32, i32) {
    %c0_i32 = arith.constant 0 : i32
    %c0_i32_0 = arith.constant 0 : i32
    return %arg0, %c0_i32 : i32, i32
  }
  func.func @transform_1(%arg0: i32) -> (i32, i32) {
    %c0_i32 = arith.constant 0 : i32
    %c0_i32_0 = arith.constant 0 : i32
    return %arg0, %c0_i32 : i32, i32
  }
  func.func @transform_2(%arg0: i32) -> (i32, i32, i32) {
    %c0_i32 = arith.constant 0 : i32
    %c0_i32_0 = arith.constant 0 : i32
    %c0_i32_1 = arith.constant 0 : i32
    %c0_i32_2 = arith.constant 0 : i32
    return %c0_i32, %c0_i32_0, %c0_i32_1 : i32, i32, i32
  }
  func.func @transform_3(%arg0: i32) -> (i32, i32, i32) {
    %c0_i32 = arith.constant 0 : i32
    %c0_i32_0 = arith.constant 0 : i32
    %c0_i32_1 = arith.constant 0 : i32
    %c0_i32_2 = arith.constant 0 : i32
    return %c0_i32, %c0_i32_0, %c0_i32_1 : i32, i32, i32
  }
  func.func @transform_4(%arg0: i32) -> (i32, i32) {
    %c0_i32 = arith.constant 0 : i32
    %c0_i32_0 = arith.constant 0 : i32
    return %arg0, %c0_i32 : i32, i32
  }
  func.func @transform_5(%arg0: i32) -> (i32, i32) {
    %c0_i32 = arith.constant 0 : i32
    %c0_i32_0 = arith.constant 0 : i32
    return %arg0, %c0_i32 : i32, i32
  }
}

</mosaic_0001>

<bundles_post_ra>
// kernel: variational_encoder_forward.1
= control target key start
LH: loop header
LB: loop body
LE: loop exit
PB: predicated region body
PF: predicated region fallthrough
CT: control target
= control target key end

     0   :  { %11 = vsyncpa [#allocation3], 0  ;;  %s308_s18 = smov [#allocation2]   ;;  %s368_s0 = inlined_call_operand.vmem [shape: f32[8,48], index: 0, kind: input, shape index: {}]   ;;  %s369_s1 = inlined_call_operand.vmem [shape: f32[8,3], index: 1, kind: input, shape index: {}]   ;;  %s370_s2 = inlined_call_operand.hbm [shape: bf16[2,48,48], index: 2, kind: input, shape index: {}]   ;;  %s371_s3 = inlined_call_operand.vmem [shape: f32[2,1,48], index: 3, kind: input, shape index: {}]   ;;  %s372_s4 = inlined_call_operand.vmem [shape: f32[8,3], index: 4, kind: output, shape index: {0}]   ;;  %s373_s5 = inlined_call_operand.vmem [shape: f32[8,1], index: 5, kind: output, shape index: {1}]  }
   0x1   :  { %s21_s19 = sshll.u32 %s308_s18, 4  ;;  %s22_s19 = int_to_ptr.vmem [resolvable:$true] %s21_s19 }
   0x2   :  { %s294_s20 = scalar_lea.vmem %s22_s19, 768  ;;  %p299_p1 = scmp.lt.s32.totalorder %s22_s19, %s22_s19 }
   0x3   :  { %p295_p0 = scmp.ne.s32.totalorder %s22_s19, %s294_s20  ;;  %p300_p2 = scmp.lt.s32.totalorder %s294_s20, %s294_s20 }
   0x5   :  { %p301_p3 = por %p300_p2, %p299_p1 }
   0x7   :  { %p302_p4 = pnand %p301_p3, %p295_p0 }
   0x9   :  { %305 = shalt.err (!%p302_p4)
}
   0xa   :  { %s309_s21 = smov 64   ;;  %s310_s22 = smov 4  }
   0xb   :  { %27 = dma.hbm_to_vmem [thread:$0]  %s370_s2, 768, %s22_s19, [#allocation3], %s309_s21, %s309_s21, %s310_s22  }
   0xc   :  { %306 = dma.done.wait [#allocation3], 768  }
   0xd   :  { %307 = vsyncadd [#allocation3], 4294966528  ;;  %v311_v0 = vmov 0.0   ;;  %vm312_vm0 = vmmov 0   ;;  %v278_v1 = vld [vmem:[#allocation2 + $0x10] sm:$0xff]   ;;  %v279_v2 = vld [vmem:[#allocation2 + $0x8] sm:$0xff]  }
   0xe   :  { %251 = vmatprep.subr.bf16.mxu0 %v311_v0  ;;  %257 = vmatprep.mubr.msk.bf16.mxu0 %vm312_vm0, %v311_v0  ;;  %v281_v3 = vld [vmem:[#allocation2 + $0x28] sm:$0xff]   ;;  %v280_v4 = vld [vmem:[#allocation2] sm:$0xff]   ;;  %vm67_vm1 = vcmask 392192   ;;  %v283_v8 = vld [vmem:[#allocation2 + $0x18] sm:$0xff]   ;;  %s313_s28 = smov 3   ;;  %vm203_vm2 = vcmask 23552  }
   0xf   :  { %261 = vmatprep.subr.bf16.mxu1 %v311_v0  ;;  %267 = vmatprep.mubr.msk.bf16.mxu1 %vm312_vm0, %v311_v0  ;;  %v34_v5 = vld [vmem:[%s368_s0] sm:$0xff]  ;;  %vm221_vm3 = vcmask 7168  }
  0x10   :  { %252 = vmatpush3.bf16.msra.mxu0 %v278_v1  ;;  %262 = vmatpush3.bf16.msra.mxu1 %v281_v3  ;;  %v35_v6 = vpack.c.bf16 %v34_v5, %v34_v5  ;;  %v282_v7 = vld [vmem:[#allocation2 + $0x20] sm:$0xff]  }
  0x11   :  { %253 = vmatprep.subr.bf16.mxu0 %v311_v0  ;;  %263 = vmatprep.subr.bf16.mxu1 %v311_v0  ;;  %v192_v9 = vld [vmem:[%s369_s1] sm:$0xff]  ;;  %s314_s1 = smov 125  }
  0x12   :  { %194 = vrot.lane.b32.xlu1 %v192_v9, %s313_s28  ;;  %v232_v10 = vld [vmem:[%s371_s3] ss:$0 sm:$0xff]  ;;  %v238_v18 = vld [vmem:[%s371_s3 + $0x1] ss:$0 sm:$0xff] }
  0x14   :  { %254 = vmatpush3.bf16.msra.mxu0 %v279_v2  ;;  %264 = vmatpush3.bf16.msra.mxu1 %v282_v7 }
  0x15   :  { %255 = vmatprep.subr.bf16.mxu0 %v311_v0  ;;  %265 = vmatprep.subr.bf16.mxu1 %v311_v0 }
  0x18   :  { %256 = vmatpush3.bf16.msra.mxu0 %v280_v4  ;;  %266 = vmatpush3.bf16.msra.mxu1 %v283_v8 }
  0x1b   :  { %258 = vmatmul.mubr.msk.bf16.vlgmr.msra.gmra.mxu0 %vm67_vm1, %v35_v6 }
  0x84   :  { %v195_v33 = vpop.permute.xlu1 %194 }
  0xdb   :  { %v105_v11 = vpop.f32.mrf.mxu0 }
  0xdc   :  { %v106_v12 = vadd.f32 %v232_v10, %v105_v11 }
  0xdd   :  { %v259_v13 = vpop.f32.mrf.mxu0 }
  0xde   :  { %v111_v14 = vmax.f32 %v106_v12, 0.0 }
  0xdf   :  { %v108_v15 = vpop.f32.mrf.mxu0 }
  0xe0   :  { %v112_v16 = vpack.c.bf16 %v111_v14, %v111_v14 }
  0xe1   :  { %v260_v17 = vpop.f32.mrf.mxu0 }
  0xe2   :  { %268 = vmatmul.mubr.msk.bf16.vlgmr.msra.gmra.mxu1 %vm67_vm1, %v112_v16 }
 0x1a2   :  { %v183_v19 = vpop.f32.mrf.mxu1 }
 0x1a3   :  { %v184_v20 = vadd.f32 %v238_v18, %v183_v19 }
 0x1a4   :  { %v269_v21 = vpop.f32.mrf.mxu1 }
 0x1a5   :  { %v206_v22 = vmul.f32 %v184_v20, %v184_v20  ;;  %v189_v25 = vmul.f32 0.5, %v184_v20  ;;  %v205_v28 = vsub.f32 -0.5, %v184_v20 }
 0x1a6   :  { %v186_v23 = vpop.f32.mrf.mxu1 }
 0x1a7   :  { %208 = vrot.lane.b32.xlu0 %v206_v22, %s313_s28  ;;  %v190_v26 = vmul.f32 1.442695, %v189_v25 }
 0x1a8   :  { %v270_v24 = vpop.f32.mrf.mxu1 }
 0x1a9   :  { %284 = vpow2.f32 %v190_v26 }
 0x1b6   :  { %v285_v27 = vpop.eup %284 }
 0x1b7   :  { %v212_v31 = vmul.f32 %v285_v27, %v285_v27  ;;  %v197_v34 = vmul.f32 %v285_v27, %v195_v33 }
 0x219   :  { %v209_v29 = vpop.permute.xlu0 %208 }
 0x21a   :  { %v211_v30 = vadd.f32 %v209_v29, %v205_v28 }
 0x21c   :  { %v213_v32 = vadd.f32 %v212_v31, %v211_v30 }
 0x21e   :  { %215 = vrot.lane.b32.xlu0 %v213_v32, %s314_s1 }
 0x222   :  { %199 = vrot.lane.b32.xlu0 %v197_v34, %s314_s1 }
 0x290   :  { %v216_v35 = vpop.permute.xlu0 %215 }
 0x291   :  { %v218_v36 = vsel %vm203_vm2, %v216_v35, 0.0 }
 0x292   :  { %219 = vadd.xlane.f32.xlu1 %v218_v36 }
 0x294   :  { %v200_v37 = vpop.permute.xlu0 %199 }
 0x295   :  { %v202_v38 = vadd.f32 %v200_v37, %v184_v20 }
 0x297   :  { %204 = vst.msk [vmem:[%s372_s4] sm:$0xff] %vm203_vm2, %v202_v38 }
 0x31b   :  { %v220_v39 = vpop.xlane.xlu1 %219 }
 0x31c   :  { %222 = vst.msk [vmem:[%s373_s5] sm:$0xff] %vm221_vm3, %v220_v39 }
 0x31d   :  { %231 = vsyncpa [#allocation3], 1 }

</bundles_post_ra>
